<compile_context>
chip_gen: v5e
topology: v5e:2x2
jax: 0.10.0
libtpu: 0.0.40
codegen_flags: <defaults>
</compile_context>

<pallas_src>
import jax
import jax.numpy as jnp
from jax.experimental import pallas as pl
from jax.experimental.pallas import tpu as pltpu


def _vmem_limit_bytes():
    # Raise the scoped-VMEM limit on 128-MiB parts (v5e/v6e); stay conservative
    # on 64-MiB parts (v7x).
    try:
        cap = pltpu.get_tpu_info().vmem_capacity_bytes
        return int(min(96 * 1024 * 1024, (cap * 3) // 4))
    except Exception:
        return 48 * 1024 * 1024


_VMEM_LIMIT = _vmem_limit_bytes()


# ---------------------------------------------------------------------------
# Kernel 1: per-layer statistics (row / col / row-col means of the weight,
# mean of the bias).  Grid over batch.  These are needed *across* layers
# (neighbour broadcasts + wb_means), so they are computed once up front.
# ---------------------------------------------------------------------------
def _stats_kernel(w_ref, b_ref, rm_ref, cm_ref, rcm_ref, bm_ref):
    w = w_ref[0].astype(jnp.float32)     # (C_in, No, Ni)
    bv = b_ref[0].astype(jnp.float32)    # (C_in, No)
    rm = jnp.mean(w, axis=1)             # mean over rows (dim=-2) -> (C_in, Ni)
    cm = jnp.mean(w, axis=2)             # mean over cols (dim=-1) -> (C_in, No)
    rm_ref[0] = rm
    cm_ref[0] = cm
    rcm_ref[0] = jnp.mean(rm, axis=1, keepdims=True)   # (C_in, 1) == mean over both
    bm_ref[0] = jnp.mean(bv, axis=1, keepdims=True)    # (C_in, 1)


def layer_stats(w, b):
    B, C, No, Ni = w.shape
    return pl.pallas_call(
        _stats_kernel,
        out_shape=(
            jax.ShapeDtypeStruct((B, C, Ni), jnp.float32),
            jax.ShapeDtypeStruct((B, C, No), jnp.float32),
            jax.ShapeDtypeStruct((B, C, 1), jnp.float32),
            jax.ShapeDtypeStruct((B, C, 1), jnp.float32),
        ),
        grid=(B,),
        in_specs=[
            pl.BlockSpec((1, C, No, Ni), lambda i: (i, 0, 0, 0)),
            pl.BlockSpec((1, C, No), lambda i: (i, 0, 0)),
        ],
        out_specs=(
            pl.BlockSpec((1, C, Ni), lambda i: (i, 0, 0)),
            pl.BlockSpec((1, C, No), lambda i: (i, 0, 0)),
            pl.BlockSpec((1, C, 1), lambda i: (i, 0, 0)),
            pl.BlockSpec((1, C, 1), lambda i: (i, 0, 0)),
        ),
        compiler_params=pltpu.CompilerParams(
            dimension_semantics=("parallel",),
            vmem_limit_bytes=_VMEM_LIMIT,
        ),
    )(w, b)


# ---------------------------------------------------------------------------
# Kernel 2: the per-layer NPLinear compute.  All four weight branches and both
# bias branches fused; every matmul goes to the MXU.  Grid over batch.
# ---------------------------------------------------------------------------
def _make_layer_kernel(c_out, n_out, n_in):
    def kernel(x_ref, rf_ref, cf_ref, zu_ref,
               w1_ref, wr_ref, wc_ref, wb_ref,
               ow_ref, ob_ref):
        x = x_ref[0]                     # (c_in, No*Ni) f32 -- flattened weight block
        rf = rf_ref[0]                   # (row_in, Ni)  row-broadcast features
        cf = cf_ref[0]                   # (col_in, No)  col-broadcast features
        zu = zu_ref[0]                   # (2*c_out, 1)  precomputed scalar terms
        zc = zu[:c_out, :]               # (c_out, 1): z2 + b1 + brc + br + bc
        uc = zu[c_out:, :]               # (c_out, 1): u2 + bb + bbrc

        # All four weight branches on the MXU (f32 accumulate).
        z1 = jnp.dot(w1_ref[...], x, preferred_element_type=jnp.float32)         # (c_out, No*Ni)
        z3 = jnp.dot(wr_ref[...], rf, preferred_element_type=jnp.float32) + zc   # (c_out, Ni)
        z4 = jnp.dot(wc_ref[...], cf, preferred_element_type=jnp.float32)        # (c_out, No)
        u1 = jnp.dot(wb_ref[...], cf, preferred_element_type=jnp.float32) + uc   # (c_out, No)

        # Row/col broadcast + store, one output row at a time (static unroll: No is
        # the hidden width of the encoded MLP, small/moderate).  Only simple 2-D
        # slices / broadcasts are used so this lowers robustly.
        # TODO(synk): for very large No, move this loop onto a grid axis and emit
        # lane-dense flat stores instead.
        for p in range(n_out):
            row = z1[:, p * n_in:(p + 1) * n_in] + z3 + z4[:, p:p + 1]   # (c_out, Ni)
            ow_ref[0, :, p, :] = row.astype(ow_ref.dtype)
        ob_ref[0] = u1.astype(ob_ref.dtype)

    return kernel


def np_linear_layer(w, rf, cf, zu, p):
    B, c_in, No, Ni = w.shape
    c_out = p["w1"].shape[0]
    row_in = rf.shape[1]
    col_in = cf.shape[1]
    # Free XLA reshape so z1 is a single 2-D (c_out, c_in) x (c_in, No*Ni) matmul.
    x_flat = w.reshape(B, c_in, No * Ni)

    kernel = _make_layer_kernel(c_out, No, Ni)
    ow, ob = pl.pallas_call(
        kernel,
        out_shape=(
            jax.ShapeDtypeStruct((B, c_out, No, Ni), jnp.float32),
            jax.ShapeDtypeStruct((B, c_out, No), jnp.float32),
        ),
        grid=(B,),
        in_specs=[
            pl.BlockSpec((1, c_in, No * Ni), lambda b: (b, 0, 0)),   # weight (flat)
            pl.BlockSpec((1, row_in, Ni), lambda b: (b, 0, 0)),      # row features
            pl.BlockSpec((1, col_in, No), lambda b: (b, 0, 0)),      # col features
            pl.BlockSpec((1, 2 * c_out, 1), lambda b: (b, 0, 0)),    # scalar table
            pl.BlockSpec((c_out, c_in), lambda b: (0, 0)),           # w1
            pl.BlockSpec((c_out, row_in), lambda b: (0, 0)),         # wr
            pl.BlockSpec((c_out, col_in), lambda b: (0, 0)),         # wc
            pl.BlockSpec((c_out, col_in), lambda b: (0, 0)),         # wb
        ],
        out_specs=(
            pl.BlockSpec((1, c_out, No, Ni), lambda b: (b, 0, 0, 0)),
            pl.BlockSpec((1, c_out, No), lambda b: (b, 0, 0)),
        ),
        compiler_params=pltpu.CompilerParams(
            dimension_semantics=("parallel",),
            vmem_limit_bytes=_VMEM_LIMIT,
        ),
    )(x_flat, rf, cf, zu, p["w1"], p["wr"], p["wc"], p["wb"])
    return ow, ob


# ---------------------------------------------------------------------------
# Glue: assemble cross-layer broadcast features + scalar tables, call kernels.
# ---------------------------------------------------------------------------
def np_linear_forward(weights, biases, params):
    L = len(weights)
    weights = [w.astype(jnp.float32) for w in weights]
    biases = [b.astype(jnp.float32) for b in biases]

    stats = [layer_stats(weights[i], biases[i]) for i in range(L)]
    row_means = [s[0] for s in stats]          # (B, C_in, n_i)
    col_means = [s[1] for s in stats]          # (B, C_in, n_{i+1})
    rc_means = [s[2][..., 0] for s in stats]   # (B, C_in)
    b_means = [s[3][..., 0] for s in stats]    # (B, C_in)
    wbm = jnp.concatenate(rc_means + b_means, axis=-1)   # (B, 2*L*C_in)

    out_w, out_b = [], []
    for i in range(L):
        p = params[i]
        # Row / col broadcast features (tiny: O(B * C_in * n), negligible vs w).
        row_feat = [row_means[i]]
        col_feat = [col_means[i], biases[i]]
        if i > 0:
            row_feat += [col_means[i - 1], biases[i - 1]]
        if i < L - 1:
            col_feat += [row_means[i + 1]]
        rf = jnp.concatenate(row_feat, axis=-2)   # (B, row_in, n_i)
        cf = jnp.concatenate(col_feat, axis=-2)   # (B, col_in, n_{i+1})

        # Fold every per-(batch, out-channel) scalar term (Linear over wb_means and
        # all conv biases) into one tiny table computed once in XLA.
        zconst = wbm @ p["wrc"].T + (p["brc"] + p["b1"] + p["br"] + p["bc"])[None, :]
        uconst = wbm @ p["wbrc"].T + (p["bbrc"] + p["bb"])[None, :]
        zu = jnp.concatenate([zconst, uconst], axis=-1)[..., None]   # (B, 2*c_out, 1)

        ow, ob = np_linear_layer(weights[i], rf, cf, zu, p)
        out_w.append(ow)
        out_b.append(ob)
    return out_w, out_b


# ---------------------------------------------------------------------------
# Deterministic parameter init (shapes per NPLinear.__init__, filter_facs = 1).
# ---------------------------------------------------------------------------
def init_params(layer_layout, c_in, c_out, key):
    L = len(layer_layout) - 1
    n_rc = 2 * L * c_in
    params = []
    for i in range(L):
        row_in = c_in + (2 * c_in if i > 0 else 0)
        col_in = 2 * c_in + (c_in if i < L - 1 else 0)
        keys = jax.random.split(jax.random.fold_in(key, i), 12)
        s = 0.2
        p = dict(
            w1=s * jax.random.normal(keys[0], (c_out, c_in), jnp.float32),
            b1=s * jax.random.normal(keys[1], (c_out,), jnp.float32),
            wrc=s * jax.random.normal(keys[2], (c_out, n_rc), jnp.float32),
            brc=s * jax.random.normal(keys[3], (c_out,), jnp.float32),
            wr=s * jax.random.normal(keys[4], (c_out, row_in), jnp.float32),
            br=s * jax.random.normal(keys[5], (c_out,), jnp.float32),
            wc=s * jax.random.normal(keys[6], (c_out, col_in), jnp.float32),
            bc=s * jax.random.normal(keys[7], (c_out,), jnp.float32),
            wb=s * jax.random.normal(keys[8], (c_out, col_in), jnp.float32),
            bb=s * jax.random.normal(keys[9], (c_out,), jnp.float32),
            wbrc=s * jax.random.normal(keys[10], (c_out, n_rc), jnp.float32),
            bbrc=s * jax.random.normal(keys[11], (c_out,), jnp.float32),
        )
        params.append(p)
    return params


# ---------------------------------------------------------------------------
# Pure-JAX reference (mirrors the PyTorch forward) for verification.
# ---------------------------------------------------------------------------
def ref_forward(weights, biases, params):
    L = len(weights)
    weights = [w.astype(jnp.float32) for w in weights]
    biases = [b.astype(jnp.float32) for b in biases]
    row_means = [w.mean(axis=-2) for w in weights]
    col_means = [w.mean(axis=-1) for w in weights]
    rc_means = [w.mean(axis=(-2, -1)) for w in weights]
    b_means = [b.mean(axis=-1) for b in biases]
    wbm = jnp.concatenate(rc_means + b_means, axis=-1)
    out_w, out_b = [], []
    for i in range(L):
        p = params[i]
        w, b = weights[i], biases[i]
        z1 = jnp.einsum("oc,bcpq->bopq", p["w1"], w) + p["b1"][None, :, None, None]
        z2 = (wbm @ p["wrc"].T + p["brc"])[:, :, None, None]
        row_b = [row_means[i]]
        col_b = [col_means[i], b]
        if i > 0:
            row_b += [col_means[i - 1], biases[i - 1]]
        if i < L - 1:
            col_b += [row_means[i + 1]]
        rf = jnp.concatenate(row_b, axis=-2)
        cf = jnp.concatenate(col_b, axis=-2)
        z3 = (jnp.einsum("or,brq->boq", p["wr"], rf) + p["br"][None, :, None])[:, :, None, :]
        z4 = (jnp.einsum("oc,bcp->bop", p["wc"], cf) + p["bc"][None, :, None])[:, :, :, None]
        out_w.append(z1 + z2 + z3 + z4)
        u1 = jnp.einsum("oc,bcp->bop", p["wb"], cf) + p["bb"][None, :, None]
        u2 = (wbm @ p["wbrc"].T + p["bbrc"])[:, :, None]
        out_b.append(u1 + u2)
    return out_w, out_b


if __name__ == "__main__":
    key = jax.random.PRNGKey(0)
    B, c_in, c_out = 2, 4, 6
    layer_layout = [6, 12, 5]          # small MLP weight-space: two weight matrices
    L = len(layer_layout) - 1

    kw, kb, kp = jax.random.split(key, 3)
    weights, biases = [], []
    for i in range(L):
        n_in, n_out = layer_layout[i], layer_layout[i + 1]
        weights.append(jax.random.normal(jax.random.fold_in(kw, i),
                                         (B, c_in, n_out, n_in), jnp.float32))
        biases.append(jax.random.normal(jax.random.fold_in(kb, i),
                                        (B, c_in, n_out), jnp.float32))
    params = init_params(layer_layout, c_in, c_out, kp)

    out_w, out_b = np_linear_forward(weights, biases, params)
    jax.block_until_ready(out_w)
    jax.block_until_ready(out_b)

    ref_w, ref_b = ref_forward(weights, biases, params)
    for a, r in zip(out_w, ref_w):
        assert a.shape == r.shape, (a.shape, r.shape)
        assert jnp.allclose(a, r, atol=1e-3, rtol=1e-3), float(jnp.max(jnp.abs(a - r)))
    for a, r in zip(out_b, ref_b):
        assert a.shape == r.shape, (a.shape, r.shape)
        assert jnp.allclose(a, r, atol=1e-3, rtol=1e-3), float(jnp.max(jnp.abs(a - r)))

    print("KERNEL_OK")
</pallas_src>

<mosaic_0001>
module attributes {stable_mosaic.version = 11 : i64} {
  func.func @_stats_kernel(%arg0: i32, %arg1: memref<1x4x12x6xf32, #tpu.memory_space<vmem>>, %arg2: memref<1x4x12xf32, #tpu.memory_space<vmem>>, %arg3: memref<1x4x6xf32, #tpu.memory_space<vmem>>, %arg4: memref<1x4x12xf32, #tpu.memory_space<vmem>>, %arg5: memref<1x4x1xf32, #tpu.memory_space<vmem>>, %arg6: memref<1x4x1xf32, #tpu.memory_space<vmem>>) attributes {dimension_semantics = [#tpu.dimension_semantics<parallel>], iteration_bounds = array<i64: 2>, scalar_prefetch = 0 : i64, scratch_operands = 0 : i64, tpu.core_type = #tpu.core_type<tc>, window_params = [{transform_indices = @transform_0, window_bounds = array<i64: 1, 4, 12, 6>}, {transform_indices = @transform_1, window_bounds = array<i64: 1, 4, 12>}, {transform_indices = @transform_2, window_bounds = array<i64: 1, 4, 6>}, {transform_indices = @transform_3, window_bounds = array<i64: 1, 4, 12>}, {transform_indices = @transform_4, window_bounds = array<i64: 1, 4, 1>}, {transform_indices = @transform_5, window_bounds = array<i64: 1, 4, 1>}]} {
    %c0 = arith.constant 0 : index
    %c0_0 = arith.constant 0 : index
    %c0_1 = arith.constant 0 : index
    %c0_2 = arith.constant 0 : index
    %0 = vector.load %arg1[%c0, %c0_0, %c0_1, %c0_2] : memref<1x4x12x6xf32, #tpu.memory_space<vmem>>, vector<1x4x12x6xf32>
    %1 = vector.shape_cast %0 : vector<1x4x12x6xf32> to vector<4x12x6xf32>
    %c0_3 = arith.constant 0 : index
    %c0_4 = arith.constant 0 : index
    %c0_5 = arith.constant 0 : index
    %2 = vector.load %arg2[%c0_3, %c0_4, %c0_5] : memref<1x4x12xf32, #tpu.memory_space<vmem>>, vector<1x4x12xf32>
    %3 = vector.shape_cast %2 : vector<1x4x12xf32> to vector<4x12xf32>
    %cst = arith.constant dense<0.000000e+00> : vector<4x6xf32>
    %4 = vector.multi_reduction <add>, %1, %cst [1] : vector<4x12x6xf32> to vector<4x6xf32>
    %cst_6 = arith.constant 1.200000e+01 : f32
    %5 = vector.broadcast %cst_6 : f32 to vector<4x6xf32>
    %6 = arith.divf %4, %5 : vector<4x6xf32>
    %cst_7 = arith.constant dense<0.000000e+00> : vector<4x12xf32>
    %7 = vector.multi_reduction <add>, %1, %cst_7 [2] : vector<4x12x6xf32> to vector<4x12xf32>
    %cst_8 = arith.constant 6.000000e+00 : f32
    %8 = vector.broadcast %cst_8 : f32 to vector<4x12xf32>
    %9 = arith.divf %7, %8 : vector<4x12xf32>
    %c0_9 = arith.constant 0 : index
    %c0_10 = arith.constant 0 : index
    %c0_11 = arith.constant 0 : index
    %10 = vector.load %arg3[%c0_9, %c0_10, %c0_11] : memref<1x4x6xf32, #tpu.memory_space<vmem>>, vector<1x4x6xf32>
    %11 = vector.shape_cast %10 : vector<1x4x6xf32> to vector<4x6xf32>
    %12 = vector.shape_cast %6 : vector<4x6xf32> to vector<1x4x6xf32>
    tpu.vector_store %arg3[%c0_9, %c0_10, %c0_11], %12 {strides = array<i32>} : memref<1x4x6xf32, #tpu.memory_space<vmem>>, vector<1x4x6xf32>,
    %c0_12 = arith.constant 0 : index
    %c0_13 = arith.constant 0 : index
    %c0_14 = arith.constant 0 : index
    %13 = vector.load %arg4[%c0_12, %c0_13, %c0_14] : memref<1x4x12xf32, #tpu.memory_space<vmem>>, vector<1x4x12xf32>
    %14 = vector.shape_cast %13 : vector<1x4x12xf32> to vector<4x12xf32>
    %15 = vector.shape_cast %9 : vector<4x12xf32> to vector<1x4x12xf32>
    tpu.vector_store %arg4[%c0_12, %c0_13, %c0_14], %15 {strides = array<i32>} : memref<1x4x12xf32, #tpu.memory_space<vmem>>, vector<1x4x12xf32>,
    %cst_15 = arith.constant dense<0.000000e+00> : vector<4xf32>
    %16 = vector.multi_reduction <add>, %6, %cst_15 [1] : vector<4x6xf32> to vector<4xf32>
    %17 = vector.shape_cast %16 : vector<4xf32> to vector<4x1xf32>
    %cst_16 = arith.constant 6.000000e+00 : f32
    %18 = vector.broadcast %cst_16 : f32 to vector<4x1xf32>
    %19 = arith.divf %17, %18 : vector<4x1xf32>
    %c0_17 = arith.constant 0 : index
    %c0_18 = arith.constant 0 : index
    %c0_19 = arith.constant 0 : index
    %20 = vector.load %arg5[%c0_17, %c0_18, %c0_19] : memref<1x4x1xf32, #tpu.memory_space<vmem>>, vector<1x4x1xf32>
    %21 = vector.shape_cast %20 : vector<1x4x1xf32> to vector<4x1xf32>
    %22 = vector.shape_cast %19 : vector<4x1xf32> to vector<1x4x1xf32>
    tpu.vector_store %arg5[%c0_17, %c0_18, %c0_19], %22 {strides = array<i32>} : memref<1x4x1xf32, #tpu.memory_space<vmem>>, vector<1x4x1xf32>,
    %cst_20 = arith.constant dense<0.000000e+00> : vector<4xf32>
    %23 = vector.multi_reduction <add>, %3, %cst_20 [1] : vector<4x12xf32> to vector<4xf32>
    %24 = vector.shape_cast %23 : vector<4xf32> to vector<4x1xf32>
    %cst_21 = arith.constant 1.200000e+01 : f32
    %25 = vector.broadcast %cst_21 : f32 to vector<4x1xf32>
    %26 = arith.divf %24, %25 : vector<4x1xf32>
    %c0_22 = arith.constant 0 : index
    %c0_23 = arith.constant 0 : index
    %c0_24 = arith.constant 0 : index
    %27 = vector.load %arg6[%c0_22, %c0_23, %c0_24] : memref<1x4x1xf32, #tpu.memory_space<vmem>>, vector<1x4x1xf32>
    %28 = vector.shape_cast %27 : vector<1x4x1xf32> to vector<4x1xf32>
    %29 = vector.shape_cast %26 : vector<4x1xf32> to vector<1x4x1xf32>
    tpu.vector_store %arg6[%c0_22, %c0_23, %c0_24], %29 {strides = array<i32>} : memref<1x4x1xf32, #tpu.memory_space<vmem>>, vector<1x4x1xf32>,
    return
  }
  func.func @transform_0(%arg0: i32) -> (i32, i32, i32, i32) {
    %c0_i32 = arith.constant 0 : i32
    %c0_i32_0 = arith.constant 0 : i32
    %c0_i32_1 = arith.constant 0 : i32
    %c0_i32_2 = arith.constant 0 : i32
    return %arg0, %c0_i32, %c0_i32_0, %c0_i32_1 : i32, i32, i32, i32
  }
  func.func @transform_1(%arg0: i32) -> (i32, i32, i32) {
    %c0_i32 = arith.constant 0 : i32
    %c0_i32_0 = arith.constant 0 : i32
    %c0_i32_1 = arith.constant 0 : i32
    return %arg0, %c0_i32, %c0_i32_0 : i32, i32, i32
  }
  func.func @transform_2(%arg0: i32) -> (i32, i32, i32) {
    %c0_i32 = arith.constant 0 : i32
    %c0_i32_0 = arith.constant 0 : i32
    %c0_i32_1 = arith.constant 0 : i32
    return %arg0, %c0_i32, %c0_i32_0 : i32, i32, i32
  }
  func.func @transform_3(%arg0: i32) -> (i32, i32, i32) {
    %c0_i32 = arith.constant 0 : i32
    %c0_i32_0 = arith.constant 0 : i32
    %c0_i32_1 = arith.constant 0 : i32
    return %arg0, %c0_i32, %c0_i32_0 : i32, i32, i32
  }
  func.func @transform_4(%arg0: i32) -> (i32, i32, i32) {
    %c0_i32 = arith.constant 0 : i32
    %c0_i32_0 = arith.constant 0 : i32
    %c0_i32_1 = arith.constant 0 : i32
    return %arg0, %c0_i32, %c0_i32_0 : i32, i32, i32
  }
  func.func @transform_5(%arg0: i32) -> (i32, i32, i32) {
    %c0_i32 = arith.constant 0 : i32
    %c0_i32_0 = arith.constant 0 : i32
    %c0_i32_1 = arith.constant 0 : i32
    return %arg0, %c0_i32, %c0_i32_0 : i32, i32, i32
  }
}

</mosaic_0001>

<bundles_post_ra>
// kernel: tpu_custom_call.1
= control target key start
LH: loop header
LB: loop body
LE: loop exit
PB: predicated region body
PF: predicated region fallthrough
CT: control target
= control target key end

     0   :  { %11 = vsyncpa [#allocation3], 0  ;;  %s970_s0 = inlined_call_operand.vmem [shape: f32[2,4,12,6], index: 0, kind: input, shape index: {}]   ;;  %s971_s1 = inlined_call_operand.vmem [shape: f32[2,4,12], index: 1, kind: input, shape index: {}]   ;;  %s972_s2 = inlined_call_operand.hbm [shape: f32[2,4,6], index: 2, kind: output, shape index: {0}]   ;;  %s973_s3 = inlined_call_operand.hbm [shape: f32[2,4,12], index: 3, kind: output, shape index: {1}]   ;;  %s974_s4 = inlined_call_operand.vmem [shape: f32[2,4,1], index: 4, kind: output, shape index: {2}]   ;;  %s975_s5 = inlined_call_operand.vmem [shape: f32[2,4,1], index: 5, kind: output, shape index: {3}]  }
   0x1   :  { %13 = vsyncpa [#allocation3 + $0x1], 0 }
   0x2   :  { %14 = vsyncpa [#allocation5], 0 }
   0x3   :  { %16 = vsyncpa [#allocation5 + $0x1], 0  ;;  %s810_s18 = smov 0   ;;  %s812_s19 = smov 0  }
   0x4   :  { %s814_s20 = smov 0   ;;  %s816_s21 = smov 0  }
   0x5 LB: > { %s831_s22 = sadd.s32 4294967295, %s776_s21   ;;  %s614_s23 = sadd.s32 4294967294, %s776_s21   ;;  %s776_s21 = sphi %s816_s21, %s981_s21   ;;  %s772_s20 = sphi %s814_s20, %s980_s20   ;;  %s768_s19 = sphi %s812_s19, %s979_s19   ;;  %s764_s18 = sphi %s810_s18, %s978_s18  }
   0x6   : > { %s835_s24 = sadd.s32 1, %s776_s21   ;;  %s81_s25 = sadd.s32 1, %s772_s20 }
   0x7   : > { %s78_s26 = ssub.s32 %s776_s21, %s835_s24  ;;  %p91_p0 = scmp.ne.s32.totalorder %s772_s20, %s768_s19 }
   0x8   : > { %p79_p1 = scmp.eq.s32.totalorder %s78_s26, 0  ;;  %p92_p2 = scmp.eq.s32.totalorder %s831_s22, 1 }
   0x9   : > { %p97_p3 = scmp.ne.s32.totalorder %s768_s19, %s764_s18  ;;  %p98_p4 = scmp.eq.s32.totalorder %s614_s23, 1 }
   0xa   : > { %s846_s27 = scalar_select %p79_p1, %s772_s20, %s81_s25  }
   0xb   : > { %p848_p5 = por %p92_p2, %p91_p0  ;;  %p852_p6 = por %p98_p4, %p97_p3 }
   0xc   : > { %p617_p7 = scmp.ge.s32.totalorder %s776_s21, 1  ;;  %p209_p8 = scmp.lt.s32.totalorder %s776_s21, 3 }
   0xe   : > { %p210_p9 = pnand %p617_p7, %p209_p8 }
   0xf   : > { %p254_p10 = scmp.lt.s32.totalorder (!%p210_p9), %s831_s22, 1  ;;  %s875_s10 = sand.u32 (!%p210_p9), 1, %s768_s19  }
  0x10   : > { %213 = sbr.rel (%p210_p9) target bundleno = 172 (0xac), region = 28  ;;  %s627_s11 = sshll.u32 (!%p210_p9), %s831_s22, 2 }
  0x11   : > { %s618_s13 = sshll.u32 (!%p210_p9), %s875_s10, 2  ;;  %s437_s16 = scalar_lea.hbm (!%p210_p9), %s972_s2, %s627_s11 }
  0x12   : > { %s234_s26 = scalar_lea.vmem (!%p210_p9), [#allocation2], %s618_s13  ;;  %s414_s7 = scalar_lea.sflag (!%p210_p9), [#allocation3], %s875_s10 }
  0x15   : > { %v778_v0 = vmov 12.0   ;;  %s860_s30 = scalar_select %p254_p10, %s831_s22, 1  ;;  %vm280_vm0 = vcmask 48128   ;;  %vm282_vm1 = vcmask 44032   ;;  %vm364_vm3 = vcmask 1041409  }
  0x16   : > { %678 = vrcp.f32 %v778_v0  ;;  %vm366_vm4 = vcmask 1042434   ;;  %vm368_vm5 = vcmask 1043459   ;;  %vm400_vm6 = vcmask 93184  }
  0x17   : > { %s631_s6 = sshll.u32 %s860_s30, 6  ;;  %s881_s12 = sshll.u32 %s860_s30, 2 }
  0x18   : > { %s258_s9 = scalar_lea.vmem %s970_s0, %s631_s6  ;;  %s262_s25 = scalar_lea.vmem %s971_s1, %s881_s12 }
  0x19   : > { %v275_v1 = vld [vmem:[%s258_s9 + $0x20] sm:$0xff]  ;;  %v273_v2 = vld [vmem:[%s258_s9 + $0x10] sm:$0xff]  ;;  %v276_v8 = vld [vmem:[%s258_s9 + $0x28] sm:$0xf]  ;;  %s439_s30 = sshll.u32 %s234_s26, 4  ;;  %s441_s6 = sshll.u32 %s437_s16, 4  ;;  %s440_s30 = int_to_ptr.vmem [resolvable:$true] %s439_s30  ;;  %s442_s6 = int_to_ptr.hbm [resolvable:$true] %s441_s6 }
  0x1a   : > { %v271_v3 = vld [vmem:[%s258_s9] sm:$0xff]  ;;  %v300_v5 = vsel %vm280_vm0, %v275_v1, 0.0  ;;  %v291_v6 = vsel %vm280_vm0, %v273_v2, 0.0  ;;  %v277_v9 = vld [vmem:[%s258_s9 + $0x30] sm:$0xff]  ;;  %v301_v10 = vsel %vm282_vm1, %v276_v8, 0.0  ;;  %s696_s8 = sshra.s32 %s442_s6, 4  ;;  %s697_s8 = int_to_ptr.hbm [resolvable:$true] %s696_s8 }
  0x1b   : > { %v281_v7 = vsel %vm280_vm0, %v271_v3, 0.0  ;;  %337 = vadd.xlane.f32.xlu2 %v300_v5  ;;  %333 = vadd.xlane.f32.xlu1 %v291_v6  ;;  %v274_v11 = vld [vmem:[%s258_s9 + $0x18] sm:$0xf]  ;;  %v272_v13 = vld [vmem:[%s258_s9 + $0x8] sm:$0xf]  ;;  %v302_v14 = vadd.f32 %v301_v10, %v300_v5  ;;  %v309_v18 = vsel %vm280_vm0, %v277_v9, 0.0  ;;  %p703_p0 = scmp.lt.s32.totalorder %s697_s8, %s972_s2 }
  0x1c   : > { %v679_v4 = vpop.eup %678  ;;  %329 = vadd.xlane.f32.xlu0 %v281_v7  ;;  %v292_v15 = vsel %vm282_vm1, %v274_v11, 0.0  ;;  %v283_v16 = vsel %vm282_vm1, %v272_v13, 0.0  ;;  %v278_v17 = vld [vmem:[%s258_s9 + $0x38] sm:$0xf]  ;;  %v279_v56 = vld [vmem:[%s262_s25] sm:$0xf] }
  0x1d   : > { %v319_v12 = vmul.f32 12.0, %v679_v4  ;;  %v293_v20 = vadd.f32 %v292_v15, %v291_v6  ;;  %v284_v21 = vadd.f32 %v283_v16, %v281_v7  ;;  %v310_v22 = vsel %vm282_vm1, %v278_v17, 0.0  ;;  %s698_s9 = scalar_lea.hbm %s697_s8, 4  ;;  %s702_s16 = scalar_lea.hbm %s972_s2, 8 }
  0x1e   : > { %v303_v23 = vrot.slane %v302_v14, 4  ;;  %v311_v24 = vadd.f32 %v310_v22, %v309_v18  ;;  %vm323_vm2 = vweird.f32 %v679_v4  ;;  %v408_v60 = vsel %vm400_vm6, %v279_v56, 0.0  ;;  %p699_p11 = scmp.ne.s32.totalorder %s697_s8, %s698_s9  ;;  %p704_p1 = scmp.lt.s32.totalorder %s702_s16, %s698_s9 }
  0x1f   : > { %v320_v19 = vsub.f32 1.0, %v319_v12  ;;  %v294_v26 = vrot.slane %v293_v20, 4  ;;  %v285_v27 = vrot.slane %v284_v21, 4 }
  0x20   : > { %v304_v28 = vadd.f32 %v303_v23, %v302_v14  ;;  %v312_v29 = vrot.slane %v311_v24, 4  ;;  %p700_p12 = pnand %p699_p11, %p848_p5  ;;  %p705_p2 = por %p704_p1, %p703_p0 }
  0x21   : > { %v321_v25 = vmul.f32 %v679_v4, %v320_v19  ;;  %v295_v30 = vadd.f32 %v294_v26, %v293_v20  ;;  %v286_v31 = vadd.f32 %v285_v27, %v284_v21 }
  0x22   : > { %v305_v32 = vrot.slane %v304_v28, 2  ;;  %v313_v33 = vadd.f32 %v312_v29, %v311_v24  ;;  %p701_p13 = pneg %p700_p12 }
  0x23   : > { %339 = vadd.xlane.f32.xlu2 %v301_v10  ;;  %v322_v34 = vadd.f32 %v679_v4, %v321_v25  ;;  %335 = vadd.xlane.f32.xlu1 %v292_v15  ;;  %v296_v35 = vrot.slane %v295_v30, 2  ;;  %v287_v36 = vrot.slane %v286_v31, 2 }
  0x24   : > { %v306_v37 = vadd.f32 %v305_v32, %v304_v28  ;;  %331 = vadd.xlane.f32.xlu0 %v283_v16  ;;  %v314_v38 = vrot.slane %v313_v33, 2  ;;  %p706_p3 = pnand %p705_p2, %p701_p13 }
  0x25   : > { %v297_v39 = vadd.f32 %v296_v35, %v295_v30  ;;  %v288_v40 = vadd.f32 %v287_v36, %v286_v31  ;;  %v878_v43 = vsel %vm323_vm2, %v679_v4, %v322_v34 }
  0x26   : > { %v307_v41 = vrot.slane %v306_v37, 1  ;;  %v315_v42 = vadd.f32 %v314_v38, %v313_v33 }
  0x27   : > { %v298_v44 = vrot.slane %v297_v39, 1  ;;  %v289_v45 = vrot.slane %v288_v40, 1 }
  0x28   : > { %v308_v46 = vadd.f32 %v307_v41, %v306_v37  ;;  %v316_v47 = vrot.slane %v315_v42, 1 }
  0x29   : > { %v299_v48 = vadd.f32 %v298_v44, %v297_v39  ;;  %v290_v49 = vadd.f32 %v289_v45, %v288_v40 }
  0x2a   : > { %v317_v50 = vadd.f32 %v316_v47, %v315_v42  ;;  %v327_v51 = vmul.f32 %v878_v43, %v308_v46 }
  0x2b   : > { %v326_v52 = vmul.f32 %v878_v43, %v299_v48  ;;  %v325_v53 = vmul.f32 %v878_v43, %v290_v49  ;;  %343 = vadd.xlane.f32.xlu1 %v310_v22 }
  0x2c   : > { %341 = vadd.xlane.f32.xlu0 %v309_v18  ;;  %v328_v54 = vmul.f32 %v878_v43, %v317_v50 }
  0x2d   : > { %v365_v55 = vsel %vm364_vm3, %v326_v52, %v325_v53 }
  0x2e   : > { %v367_v57 = vsel %vm366_vm4, %v327_v51, %v365_v55 }
  0x2f   : > { %v369_v58 = vsel %vm368_vm5, %v328_v54, %v367_v57 }
  0x30   : > { %v402_v59 = vsel %vm282_vm1, %v369_v58, 0.0  ;;  %371 = vst.msk [vmem:[%s234_s26] sm:$0xf] %vm282_vm1, %v369_v58 }
  0x31   : > { %403 = vadd.xlane.f32.xlu2 %v402_v59 }
  0x32   : > { %709 = shalt.err (!%p706_p3)
}
  0x33   : > { %632 = dma.vmem_to_hbm [thread:$0]  (%p848_p5), %s440_s30, 64, %s442_s6, %s414_s7   ;;  %v779_v61 = vmov 6.0   ;;  %v380_v5 = vlaneseq  ;;  %vm385_vm8 = vcmask 130112   ;;  %vm406_vm9 = vcmask 3072  }
  0x34   : > { %409 = vadd.xlane.f32.xlu0 %v408_v60  ;;  %680 = vrcp.f32 %v779_v61  ;;  %s451_s30 = scalar_lea.hbm %s973_s3, %s627_s11  ;;  %s241_s6 = scalar_lea.vmem [#allocation4], %s618_s13 }
  0x35   : > { %v381_v7 = vand.u32 127, %v380_v5  ;;  %s453_s7 = sshll.u32 %s241_s6, 4  ;;  %s455_s8 = sshll.u32 %s451_s30, 4  ;;  %s454_s7 = int_to_ptr.vmem [resolvable:$true] %s453_s7  ;;  %s456_s8 = int_to_ptr.hbm [resolvable:$true] %s455_s8 }
  0x36   : > { %s266_s14 = scalar_lea.vmem %s974_s4, %s881_s12  ;;  %s270_s15 = scalar_lea.vmem %s975_s5, %s881_s12 }
  0x37   : > { %v383_v9 = vadd.s32 4294967288, %v381_v7  ;;  %s419_s16 = scalar_lea.sflag [#allocation5], %s875_s10  ;;  %s724_s17 = sshra.s32 %s456_s8, 4  ;;  %s725_s17 = int_to_ptr.hbm [resolvable:$true] %s724_s17 }
  0x38   : > { %s726_s23 = scalar_lea.hbm %s725_s17, 4  ;;  %s730_s30 = scalar_lea.hbm %s973_s3, 8 }
  0x39   : > { %p727_p4 = scmp.ne.s32.totalorder %s725_s17, %s726_s23  ;;  %p731_p9 = scmp.lt.s32.totalorder %s725_s17, %s973_s3 }
  0x3a   : > { %v681_v62 = vpop.eup %680  ;;  %p732_p10 = scmp.lt.s32.totalorder %s730_s30, %s726_s23 }
  0x3b   : > { %v346_v63 = vmul.f32 6.0, %v681_v62  ;;  %vm350_vm7 = vweird.f32 %v681_v62  ;;  %p728_p7 = pnand %p727_p4, %p848_p5 }
  0x3c   : > { %p733_p11 = por %p732_p10, %p731_p9 }
  0x3d   : > { %v347_v0 = vsub.f32 1.0, %v346_v63  ;;  %p729_p8 = pneg %p728_p7 }
  0x3f   : > { %v348_v1 = vmul.f32 %v681_v62, %v347_v0  ;;  %p734_p12 = pnand %p733_p11, %p729_p8 }
  0x41   : > { %v349_v6 = vadd.f32 %v681_v62, %v348_v1 }
  0x43   : > { %v351_v8 = vsel %vm350_vm7, %v681_v62, %v349_v6 }
  0x8e   : > { %v338_v2 = vpop.xlane.xlu2 %337  ;;  %v334_v3 = vpop.xlane.xlu1 %333 }
  0x8f   : > { %v330_v4 = vpop.xlane.xlu0 %329  ;;  %v354_v14 = vmul.f32 %v351_v8, %v334_v3  ;;  %v356_v17 = vmul.f32 %v351_v8, %v338_v2 }
  0x90   : > { %v352_v15 = vmul.f32 %v351_v8, %v330_v4 }
  0x91   : > { %v387_v21 = vperm.slane %v354_v14, %v381_v7  ;;  %v390_v23 = vperm.slane %v356_v17, %v381_v7 }
  0x92   : > { %v382_v22 = vperm.slane %v352_v15, %v381_v7 }
  0x96   : > { %v340_v10 = vpop.xlane.xlu2 %339  ;;  %v336_v11 = vpop.xlane.xlu1 %335 }
  0x97   : > { %v355_v12 = vmul.f32 %v351_v8, %v336_v11  ;;  %v332_v13 = vpop.xlane.xlu0 %331  ;;  %v357_v18 = vmul.f32 %v351_v8, %v340_v10 }
  0x98   : > { %v353_v16 = vmul.f32 %v351_v8, %v332_v13 }
  0x99   : > { %v388_v19 = vperm.slane %v355_v12, %v383_v9  ;;  %v391_v24 = vperm.slane %v357_v18, %v383_v9 }
  0x9a   : > { %v384_v20 = vperm.slane %v353_v16, %v383_v9 }
  0x9b   : > { %v389_v25 = vsel %vm385_vm8, %v388_v19, %v387_v21  ;;  %v392_v31 = vsel %vm385_vm8, %v391_v24, %v390_v23 }
  0x9c   : > { %v386_v26 = vsel %vm385_vm8, %v384_v20, %v382_v22 }
  0x9d   : > { %v396_v32 = vsel %vm364_vm3, %v389_v25, %v386_v26 }
  0x9e   : > { %v344_v27 = vpop.xlane.xlu1 %343  ;;  %v397_v37 = vsel %vm366_vm4, %v392_v31, %v396_v32 }
  0x9f   : > { %v359_v28 = vmul.f32 %v351_v8, %v344_v27  ;;  %v342_v29 = vpop.xlane.xlu0 %341 }
  0xa0   : > { %v358_v30 = vmul.f32 %v351_v8, %v342_v29 }
  0xa1   : > { %v394_v33 = vperm.slane %v359_v28, %v383_v9 }
  0xa2   : > { %v393_v34 = vperm.slane %v358_v30, %v381_v7 }
  0xa4   : > { %v395_v35 = vsel %vm385_vm8, %v394_v33, %v393_v34  ;;  %v404_v36 = vpop.xlane.xlu2 %403 }
  0xa5   : > { %v405_v38 = vmul.f32 %v404_v36, %v351_v8  ;;  %v398_v39 = vsel %vm368_vm5, %v395_v35, %v397_v37 }
  0xa6   : > { %401 = vst.msk [vmem:[%s241_s6] sm:$0xf] %vm400_vm6, %v398_v39 }
  0xa7   : > { %v410_v40 = vpop.xlane.xlu0 %409  ;;  %407 = vst.msk [vmem:[%s266_s14] sm:$0xf] %vm406_vm9, %v405_v38 }
  0xa8   : > { %737 = shalt.err (!%p734_p12)
}
  0xa9   : > { %633 = dma.vmem_to_hbm [thread:$0]  (%p848_p5), %s454_s7, 64, %s456_s8, %s419_s16   ;;  %v411_v41 = vmul.f32 %v410_v40, %v878_v43 }
  0xab   : > { %412 = vst.msk [vmem:[%s270_s15] sm:$0xf] %vm406_vm9, %v411_v41 }
  0xac PF: > { %p643_p13 = scmp.ge.s32.totalorder %s776_s21, 2  ;;  %s473_s10 = sand.u32 1, %s764_s18  }
  0xad   : > { %s474_s12 = scalar_lea.sflag [#allocation3], %s473_s10 }
  0xae   : > { %p637_p0 = pnand %p643_p13, %p852_p6 }
  0xb0   : > { %p638_p1 = pneg %p637_p0 }
  0xb2   : > { %755 = dma.done.wait (%p638_p1), %s474_s12, 64  }
  0xb3   : > { %757 = vsyncadd (%p638_p1), %s474_s12, 4294967232  ;;  %s484_s6 = scalar_lea.sflag [#allocation5], %s473_s10 }
  0xb4   : > { %759 = dma.done.wait (%p638_p1), %s484_s6, 64  }
  0xb5   : > { %761 = vsyncadd (%p638_p1), %s484_s6, 4294967232  ;;  %p19_p5 = scmp.ge.s32.totalorder %s835_s24, 4   ;;  %s978_s18 = smov %s768_s19 }
  0xb6   : > { %s979_s19 = smov %s772_s20  ;;  %s980_s20 = smov %s846_s27 }
  0xb7   : > { %s981_s21 = smov %s835_s24  ;;  %21 = sbr.rel (!%p19_p5) target bundleno = 5 (0x5), region = 107 }
  0xbc   :  { %504 = vsyncpa [#allocation3], 1 }
  0xbd   :  { %506 = vsyncpa [#allocation3 + $0x1], 1 }
  0xbe   :  { %507 = vsyncpa [#allocation5], 1 }
  0xbf   :  { %509 = vsyncpa [#allocation5 + $0x1], 1 }

</bundles_post_ra>
